<compile_context>
chip_gen: v7x
topology: tpu7x:2x2x1
jax: 0.10.0
libtpu: 0.0.40
codegen_flags: <defaults>
</compile_context>

<pallas_src>
import jax
import jax.numpy as jnp
from jax.experimental import pallas as pl
from jax.experimental.pallas import tpu as pltpu

LANES = 128
SUBLANES = 8
CHUNK_ROWS = 1024                      # f32 intermediates per inner chunk: 512 KiB
TARGET_TILE_BYTES = 2 * 1024 * 1024    # per-input, per-pipeline-buffer DMA tile


def _cdiv(a, b):
    return -(-a // b)


def _round_up(x, m):
    return _cdiv(x, m) * m


def _make_kernel(rows, tile_rows, chunk_rows, inner_steps, needs_mask):
    """Static sizes and the mask decision are baked in at trace time."""
    n_full_chunks = tile_rows // chunk_rows
    tail_chunk = tile_rows - n_full_chunks * chunk_rows   # static, multiple of 8

    def kernel(logits_ref, targets_ref, out_ref):
        p = pl.program_id(0)   # "parallel"  -> TensorCore split on multi-TC chips
        j = pl.program_id(1)   # "arbitrary" -> reduction axis (resident accumulator)

        @pl.when(j == 0)
        def _init():
            out_ref[...] = jnp.zeros_like(out_ref)

        block_idx = p * inner_steps + j
        row_start = block_idx * tile_rows          # int32: rows < 2**31 assumed

        def one_chunk(r0, cr, masked, bound):
            l = logits_ref[pl.ds(r0, cr), :].astype(jnp.float32)
            t = targets_ref[pl.ds(r0, cr), :].astype(jnp.float32)
            d = jax.nn.sigmoid(l) - t
            d2 = d * d
            if masked:
                # Row-bound mask: only executed for the single block that
                # straddles the end of the data.  Keep jnp.where (NOT a
                # multiply): padded VMEM rows may hold NaN/Inf garbage.
                row = jax.lax.broadcasted_iota(jnp.int32, (cr, LANES), 0)
                d2 = jnp.where(r0 + row < bound, d2, 0.0)
            # Fold (cr, 128) -> (8, 128) with pure VPU adds and accumulate.
            out_ref[...] += jnp.sum(
                d2.reshape(cr // SUBLANES, SUBLANES, LANES), axis=0)

        def accumulate(masked, bound=None):
            if n_full_chunks > 0:
                def chunk_body(c, carry):
                    r0 = pl.multiple_of(c * chunk_rows, chunk_rows)
                    one_chunk(r0, chunk_rows, masked, bound)
                    return carry
                jax.lax.fori_loop(0, n_full_chunks, chunk_body, 0)
            if tail_chunk > 0:
                one_chunk(n_full_chunks * chunk_rows, tail_chunk, masked, bound)

        if needs_mask:
            is_full = row_start + tile_rows <= rows

            @pl.when(is_full)
            def _steady():
                accumulate(masked=False)

            @pl.when(jnp.logical_not(is_full) & (row_start < rows))
            def _straddle():
                accumulate(masked=True, bound=rows - row_start)
            # Blocks with row_start >= rows (core-split overflow) contribute 0.
        else:
            accumulate(masked=False)

    return kernel


def l2_loss_with_logit(logits, targets):
    """sum((sigmoid(logits) - targets)**2), returned as a float32 scalar."""
    assert logits.shape == targets.shape
    n = int(logits.size)

    lf = jnp.ravel(logits)
    tf = jnp.ravel(targets)

    rows = n // LANES
    n_main = rows * LANES

    # <128-element ragged tail: tiny jnp reduction outside the kernel, so the
    # kernel path stays lane-aligned and mask-free in steady state.
    tail = jnp.float32(0.0)
    if n_main != n:
        # TODO(synk): the prefix slice may still materialize one copy in XLA;
        # a 1-D BlockSpec over the raw flat array would make this zero-copy.
        tl = lf[n_main:].astype(jnp.float32)
        tt = tf[n_main:].astype(jnp.float32)
        tail = jnp.sum((jax.nn.sigmoid(tl) - tt) ** 2)
        lf = lf[:n_main]
        tf = tf[:n_main]

    if rows == 0:
        return tail

    lf = lf.reshape(rows, LANES)
    tf = tf.reshape(rows, LANES)

    itemsize = max(jnp.dtype(lf.dtype).itemsize, jnp.dtype(tf.dtype).itemsize)
    total_bytes = rows * LANES * itemsize

    # Block-count-first tiling: native-dtype tiles <= ~2 MiB, an even number
    # of blocks (no overflow block when split across 2 TensorCores), and >= 4
    # blocks (>= 2 pipeline steps per core) when tiles can stay >= ~1 MiB.
    n_blocks = _cdiv(total_bytes, TARGET_TILE_BYTES)
    if total_bytes >= 2 * TARGET_TILE_BYTES:
        n_blocks = max(n_blocks, 4)
    if n_blocks > 1:
        n_blocks = _round_up(n_blocks, 2)
    tile_rows = _round_up(_cdiv(rows, n_blocks), SUBLANES)
    chunk_rows = min(CHUNK_ROWS, tile_rows)
    n_blocks = _cdiv(rows, tile_rows)

    # Unconditional 2-way TensorCore split whenever there are >= 2 blocks
    # (uses both TCs on v7x; near-zero-cost bookkeeping on 1-TC v5e/v6e).
    n_cores = 2 if n_blocks >= 2 else 1
    inner_steps = _cdiv(n_blocks, n_cores)

    # Mask only if the grid covers more rows than exist (straddling last block
    # and/or a rare core-split overflow block).
    needs_mask = n_cores * inner_steps * tile_rows != rows

    kernel = _make_kernel(rows, tile_rows, chunk_rows, inner_steps, needs_mask)

    def in_map(p, j):
        # Clamp so a (rare) overflow block's DMA stays in bounds; the kernel
        # skips its contribution.
        return (jnp.minimum(p * inner_steps + j, n_blocks - 1), 0)

    partials = pl.pallas_call(
        kernel,
        out_shape=jax.ShapeDtypeStruct((n_cores * SUBLANES, LANES), jnp.float32),
        grid_spec=pltpu.PrefetchScalarGridSpec(
            num_scalar_prefetch=0,
            grid=(n_cores, inner_steps),
            in_specs=[
                pl.BlockSpec((tile_rows, LANES), in_map),
                pl.BlockSpec((tile_rows, LANES), in_map),
            ],
            out_specs=pl.BlockSpec((SUBLANES, LANES), lambda p, j: (p, 0)),
        ),
        compiler_params=pltpu.CompilerParams(
            dimension_semantics=("parallel", "arbitrary"),
            vmem_limit_bytes=32 * 1024 * 1024,
        ),
    )(lf, tf)

    # One tiny (<= 2048 element) reduction outside the kernel.
    return jnp.sum(partials) + tail


def _reference(logits, targets):
    p = jax.nn.sigmoid(logits.astype(jnp.float32))
    return jnp.sum((p - targets.astype(jnp.float32)) ** 2)


if __name__ == "__main__":
    key = jax.random.PRNGKey(0)
    k1, k2, k3, k4 = jax.random.split(key, 4)

    # 1) NCHW shape from the module spec: single-block, mask-free path.
    shape = (2, 4, 16, 16)
    logits = jax.random.normal(k1, shape, dtype=jnp.float32)
    targets = jax.random.uniform(k2, shape, dtype=jnp.float32)  # soft targets
    loss = jax.block_until_ready(l2_loss_with_logit(logits, targets))
    ref = _reference(logits, targets)
    assert jnp.allclose(loss, ref, rtol=1e-5, atol=1e-5), (loss, ref)

    # 2) Larger bf16 input: four 1 MiB native-dtype tiles, 2-TC split with two
    #    pipeline steps per core, chunked f32 compute in-kernel.
    shape2 = (8, 64, 64, 64)
    logits2 = jax.random.normal(k3, shape2, dtype=jnp.bfloat16)
    targets2 = jax.random.uniform(k4, shape2, dtype=jnp.bfloat16)
    loss2 = jax.block_until_ready(l2_loss_with_logit(logits2, targets2))
    ref2 = _reference(logits2, targets2)
    assert jnp.allclose(loss2, ref2, rtol=1e-4, atol=1e-2), (loss2, ref2)

    # 3) Ragged, non-lane-aligned size: masked straddling block + jnp tail.
    shape3 = (3, 5, 7, 11)
    logits3 = jax.random.normal(k1, shape3, dtype=jnp.float32)
    targets3 = jax.random.uniform(k2, shape3, dtype=jnp.float32)
    loss3 = jax.block_until_ready(l2_loss_with_logit(logits3, targets3))
    ref3 = _reference(logits3, targets3)
    assert jnp.allclose(loss3, ref3, rtol=1e-5, atol=1e-5), (loss3, ref3)

    print("KERNEL_OK")
</pallas_src>

<mosaic_0001>
module attributes {stable_mosaic.version = 11 : i64} {
  func.func @kernel(%arg0: i32, %arg1: i32, %arg2: memref<16x128xf32, #tpu.memory_space<vmem>>, %arg3: memref<16x128xf32, #tpu.memory_space<vmem>>, %arg4: memref<8x128xf32, #tpu.memory_space<vmem>>) attributes {dimension_semantics = [#tpu.dimension_semantics<parallel>, #tpu.dimension_semantics<arbitrary>], iteration_bounds = array<i64: 1, 1>, scalar_prefetch = 0 : i64, scratch_operands = 0 : i64, tpu.core_type = #tpu.core_type<tc>, window_params = [{transform_indices = @transform_0, window_bounds = array<i64: 16, 128>}, {transform_indices = @transform_1, window_bounds = array<i64: 16, 128>}, {transform_indices = @transform_2, window_bounds = array<i64: 8, 128>}]} {
    %c0_i32 = arith.constant 0 : i32
    %0 = arith.cmpi eq, %arg1, %c0_i32 : i32
    %1 = arith.extui %0 : i1 to i32
    %c0_i32_0 = arith.constant 0 : i32
    %2 = arith.cmpi ne, %1, %c0_i32_0 : i32
    scf.if %2 {
      %cst_8 = arith.constant 0.000000e+00 : f32
      %21 = vector.broadcast %cst_8 : f32 to vector<8x128xf32>
      %c0_9 = arith.constant 0 : index
      %c0_10 = arith.constant 0 : index
      %22 = vector.load %arg4[%c0_9, %c0_10] : memref<8x128xf32, #tpu.memory_space<vmem>>, vector<8x128xf32>
      tpu.vector_store %arg4[%c0_9, %c0_10], %21 {strides = array<i32>} : memref<8x128xf32, #tpu.memory_space<vmem>>, vector<8x128xf32>,
    } else {
    }
    %c0_i32_1 = arith.constant 0 : i32
    %c16_i32 = arith.constant 16 : i32
    %3 = arith.muli %c0_i32_1, %c16_i32 : i32
    %4 = tpu.assume_multiple %3, 16 : i32
    %5 = arith.index_cast %4 : i32 to index
    %c0 = arith.constant 0 : index
    %6 = vector.load %arg2[%5, %c0] : memref<16x128xf32, #tpu.memory_space<vmem>>, vector<16x128xf32>
    %7 = arith.index_cast %4 : i32 to index
    %c0_2 = arith.constant 0 : index
    %8 = vector.load %arg3[%7, %c0_2] : memref<16x128xf32, #tpu.memory_space<vmem>>, vector<16x128xf32>
    %9 = arith.negf %6 : vector<16x128xf32>
    %10 = math.exp %9 : vector<16x128xf32>
    %cst = arith.constant 1.000000e+00 : f32
    %11 = vector.broadcast %cst : f32 to vector<16x128xf32>
    %12 = arith.addf %11, %10 : vector<16x128xf32>
    %13 = arith.divf %11, %12 : vector<16x128xf32>
    %14 = arith.subf %13, %8 : vector<16x128xf32>
    %15 = arith.mulf %14, %14 : vector<16x128xf32>
    %c0_3 = arith.constant 0 : index
    %c0_4 = arith.constant 0 : index
    %16 = vector.load %arg4[%c0_3, %c0_4] : memref<8x128xf32, #tpu.memory_space<vmem>>, vector<8x128xf32>
    %17 = vector.shape_cast %15 : vector<16x128xf32> to vector<2x8x128xf32>
    %cst_5 = arith.constant dense<0.000000e+00> : vector<8x128xf32>
    %18 = vector.multi_reduction <add>, %17, %cst_5 [0] : vector<2x8x128xf32> to vector<8x128xf32>
    %19 = arith.addf %16, %18 : vector<8x128xf32>
    %c0_6 = arith.constant 0 : index
    %c0_7 = arith.constant 0 : index
    %20 = vector.load %arg4[%c0_6, %c0_7] : memref<8x128xf32, #tpu.memory_space<vmem>>, vector<8x128xf32>
    tpu.vector_store %arg4[%c0_6, %c0_7], %19 {strides = array<i32>} : memref<8x128xf32, #tpu.memory_space<vmem>>, vector<8x128xf32>,
    %c1_i32 = arith.constant 1 : i32
    return
  }
  func.func @transform_0(%arg0: i32, %arg1: i32) -> (i32, i32) {
    %c1_i32 = arith.constant 1 : i32
    %0 = arith.muli %arg0, %c1_i32 : i32
    %1 = arith.addi %0, %arg1 : i32
    %c0_i32 = arith.constant 0 : i32
    %2 = arith.minsi %1, %c0_i32 : i32
    %c0_i32_0 = arith.constant 0 : i32
    %c0_i32_1 = arith.constant 0 : i32
    return %2, %c0_i32_0 : i32, i32
  }
  func.func @transform_1(%arg0: i32, %arg1: i32) -> (i32, i32) {
    %c1_i32 = arith.constant 1 : i32
    %0 = arith.muli %arg0, %c1_i32 : i32
    %1 = arith.addi %0, %arg1 : i32
    %c0_i32 = arith.constant 0 : i32
    %2 = arith.minsi %1, %c0_i32 : i32
    %c0_i32_0 = arith.constant 0 : i32
    %c0_i32_1 = arith.constant 0 : i32
    return %2, %c0_i32_0 : i32, i32
  }
  func.func @transform_2(%arg0: i32, %arg1: i32) -> (i32, i32) {
    %c0_i32 = arith.constant 0 : i32
    %c0_i32_0 = arith.constant 0 : i32
    return %arg0, %c0_i32 : i32, i32
  }
}

</mosaic_0001>

<bundles_post_ra>
// kernel: tpu_custom_call.1
= control target key start
LH: loop header
LB: loop body
LE: loop exit
PB: predicated region body
PF: predicated region fallthrough
CT: control target
= control target key end

     0   :  { %7 = vsyncpa [#allocation3], 0  ;;  %s253_s0 = inlined_call_operand.hbm [shape: f32[16,128], index: 0, kind: input, shape index: {}]   ;;  %s254_s1 = inlined_call_operand.hbm [shape: f32[16,128], index: 1, kind: input, shape index: {}]   ;;  %s255_s2 = inlined_call_operand.hbm [shape: f32[8,128], index: 2, kind: output, shape index: {}]  }
   0x1   :  { %8 = vsyncpa [#allocation6], 0 }
   0x2   :  { %9 = vsyncpa [#allocation4], 0  ;;  %s197_s9 = smov [#allocation2]   ;;  %s125_s13 = scalar_lea.hbm %s253_s0, 256 }
   0x3   :  { %s21_s10 = sshll.u32 %s197_s9, 4  ;;  %p126_p0 = scmp.ne.s32.totalorder %s253_s0, %s125_s13  ;;  %s22_s10 = int_to_ptr.vmem [resolvable:$true] %s21_s10 }
   0x4   :  { %p129_p1 = scmp.lt.u32.totalorder %s125_s13, %s253_s0 }
   0x6   :  { %p131_p2 = pnand %p129_p1, %p126_p0 }
   0x8   :  { %134 = shalt.err (!%p131_p2)
}
   0x9   :  { %s135_s18 = scalar_lea.vmem %s22_s10, 256  ;;  %p140_p4 = scmp.lt.s32.totalorder %s22_s10, %s22_s10 }
   0xa   :  { %p136_p3 = scmp.ne.s32.totalorder %s22_s10, %s135_s18  ;;  %p141_p5 = scmp.lt.s32.totalorder %s135_s18, %s135_s18 }
   0xc   :  { %p142_p6 = por %p141_p5, %p140_p4 }
   0xe   :  { %p143_p7 = pnand %p142_p6, %p136_p3 }
  0x10   :  { %146 = shalt.err (!%p143_p7)
}
  0x11   :  { %s198_s19 = smov 128   ;;  %s199_s20 = smov 8  }
  0x12   :  { %27 = dma.hbm_to_vmem [thread:$0]  %s253_s0, 256, %s22_s10, [#allocation3], %s198_s19, %s198_s19, %s199_s20  }
  0x13   :  { %s200_s23 = smov [#allocation5]   ;;  %s147_s27 = scalar_lea.hbm %s254_s1, 256 }
  0x14   :  { %s39_s24 = sshll.u32 %s200_s23, 4  ;;  %p148_p8 = scmp.ne.s32.totalorder %s254_s1, %s147_s27  ;;  %s40_s24 = int_to_ptr.vmem [resolvable:$true] %s39_s24 }
  0x15   :  { %p151_p9 = scmp.lt.u32.totalorder %s147_s27, %s254_s1 }
  0x17   :  { %p153_p10 = pnand %p151_p9, %p148_p8 }
  0x19   :  { %156 = shalt.err (!%p153_p10)
}
  0x1a   :  { %s157_s4 = scalar_lea.vmem %s40_s24, 256  ;;  %p162_p12 = scmp.lt.s32.totalorder %s40_s24, %s40_s24 }
  0x1b   :  { %p158_p11 = scmp.ne.s32.totalorder %s40_s24, %s157_s4  ;;  %p163_p13 = scmp.lt.s32.totalorder %s157_s4, %s157_s4 }
  0x1d   :  { %p164_p0 = por %p163_p13, %p162_p12 }
  0x1f   :  { %p165_p1 = pnand %p164_p0, %p158_p11 }
  0x21   :  { %168 = shalt.err (!%p165_p1)
}
  0x22   :  { %45 = dma.hbm_to_vmem [thread:$0]  %s254_s1, 256, %s40_s24, [#allocation6], %s198_s19, %s198_s19, %s199_s20  }
  0x23   :  { %191 = dma.done.wait [#allocation3], 256  }
  0x24   :  { %192 = vsyncadd [#allocation3], 4294967040 }
  0x25   :  { %193 = dma.done.wait [#allocation6], 256  }
  0x26   :  { %194 = vsyncadd [#allocation6], 4294967040  ;;  %v65_v0 = vld [vmem:[#allocation2] sm:$0xff]  ;;  %v66_v1 = vld [vmem:[#allocation2 + $0x8] sm:$0xff]  ;;  %s201_s1 = smov [#allocation7]  }
  0x27   :  { %v109_v2 = vmul.f32 -1.442695, %v65_v0  ;;  %v110_v3 = vmul.f32 -1.442695, %v66_v1  ;;  %v67_v8 = vld [vmem:[#allocation5] sm:$0xff]  ;;  %v68_v9 = vld [vmem:[#allocation5 + $0x8] sm:$0xff] }
  0x28   :  { %s95_s6 = sshll.u32 %s201_s1, 4  ;;  %s96_s6 = int_to_ptr.vmem [resolvable:$true] %s95_s6 }
  0x29   :  { %117 = vpow2.f32 %v109_v2  ;;  %s169_s7 = scalar_lea.vmem %s96_s6, 128  ;;  %p174_p3 = scmp.lt.s32.totalorder %s96_s6, %s96_s6 }
  0x2a   :  { %119 = vpow2.f32 %v110_v3  ;;  %p170_p2 = scmp.ne.s32.totalorder %s96_s6, %s169_s7  ;;  %p175_p4 = scmp.lt.s32.totalorder %s169_s7, %s169_s7 }
  0x2c   :  { %p176_p5 = por %p175_p4, %p174_p3 }
  0x2e   :  { %p177_p6 = pnand %p176_p5, %p170_p2 }
  0x33   :  { %v118_v4 = vpop.eup %117 }
  0x34   :  { %v120_v5 = vpop.eup %119  ;;  %v75_v6 = vadd.f32 1.0, %v118_v4 }
  0x35   :  { %v76_v7 = vadd.f32 1.0, %v120_v5 }
  0x36   :  { %121 = vrcp.f32 %v75_v6 }
  0x37   :  { %123 = vrcp.f32 %v76_v7 }
  0x40   :  { %v122_v10 = vpop.eup %121 }
  0x41   :  { %v124_v11 = vpop.eup %123  ;;  %v81_v12 = vsub.f32 %v122_v10, %v67_v8 }
  0x42   :  { %v82_v13 = vsub.f32 %v124_v11, %v68_v9 }
  0x43   :  { %v83_v14 = vmul.f32 %v81_v12, %v81_v12 }
  0x44   :  { %v84_v15 = vmul.f32 %v82_v13, %v82_v13 }
  0x46   :  { %v86_v16 = vadd.f32 %v84_v15, %v83_v14 }
  0x48   :  { %88 = vst [vmem:[#allocation7] sm:$0xff] %v86_v16 }
  0x49   :  { %180 = shalt.err (!%p177_p6)
}
  0x4a   :  { %s181_s10 = scalar_lea.hbm %s255_s2, 128 }
  0x4b   :  { %p182_p7 = scmp.ne.s32.totalorder %s255_s2, %s181_s10  ;;  %p185_p8 = scmp.lt.u32.totalorder %s181_s10, %s255_s2 }
  0x4d   :  { %p187_p9 = pnand %p185_p8, %p182_p7 }
  0x4f   :  { %190 = shalt.err (!%p187_p9)
}
  0x50   :  { %98 = dma.vmem_to_hbm [thread:$0]  %s96_s6, 128, %s255_s2, [#allocation4]  }
  0x51   :  { %195 = dma.done.wait [#allocation4], 128  }
  0x52   :  { %196 = vsyncadd [#allocation4], 4294967168 }
  0x53   :  { %102 = vsyncpa [#allocation3], 1 }
  0x54   :  { %103 = vsyncpa [#allocation6], 1 }
  0x55   :  { %104 = vsyncpa [#allocation4], 1 }

</bundles_post_ra>
